<compile_context>
chip_gen: v5e
topology: v5e:2x2
jax: 0.10.0
libtpu: 0.0.40
codegen_flags: <defaults>
</compile_context>

<pallas_src>
import jax
import jax.numpy as jnp
from jax import lax
from jax.experimental import pallas as pl
from jax.experimental.pallas import tpu as pltpu


def _blockdiag(a, b):
    """[[a, 0], [0, b]] -- lets one fat matmul serve both branches."""
    z_tr = jnp.zeros((a.shape[0], b.shape[1]), a.dtype)
    z_bl = jnp.zeros((b.shape[0], a.shape[1]), b.dtype)
    return jnp.concatenate(
        [jnp.concatenate([a, z_tr], axis=1),
         jnp.concatenate([z_bl, b], axis=1)], axis=0)


def _pick_row_tile(n):
    if n <= 256:
        return n                        # single tile == full dim, no (8,128) issue
    tm = 256                            # multiple of 8; ragged last tile is fine
    # keep the two double-buffered bf16 (TM, N) tiles under ~24 MiB
    while tm > 8 and 4 * tm * n * 2 > (24 << 20):
        tm //= 2
    return tm


def _vmem_limit_bytes(n, tm, fin, fout):
    # rough footprint: 2 double-buffered bf16 (TM,N) tiles + resident bf16
    # feature/intermediate matrices + double-buffered f32 output slab + headroom.
    need = (2 * 2 * tm * n * 2
            + n * (3 * fin + 4 * fout) * 2
            + 2 * tm * (fin + 5 * fout) * 4
            + (4 << 20))
    cap = 48 << 20                      # safe on every generation (v7x has 64 MiB)
    try:
        cap = int(0.75 * pltpu.get_tpu_info().vmem_capacity_bytes)
    except Exception:
        pass
    return int(min(max(need, 16 << 20), cap))


def encoder_sparse_forward(feat, feat_a, adj, graph_neigh,
                           w1, w2, dw1, db1, dw2, db2,
                           compute_dtype=jnp.bfloat16):
    """Fused Encoder_sparse forward (eval mode).

    Weight layout: w1 (Fin,Fout), w2 (Fout,Fin); decoder linears stored as
    (in,out) + bias (1,out) so the kernel computes x @ W + b.
    Returns (hiden_emb, h, dec, dec_a, ret, ret_a), all float32.
    """
    f32 = jnp.float32
    cdt = compute_dtype
    N, Fin = feat.shape
    Fout = w1.shape[1]

    TM = _pick_row_tile(N)
    T = pl.cdiv(N, TM)
    vlim = _vmem_limit_bytes(N, TM, Fin, Fout)

    # ---- wrapper-side packing (layout plumbing only, all O(N*F) or smaller) ----
    feat_wide = jnp.concatenate([feat, feat_a], axis=1).astype(cdt)   # (N, 2Fin)
    w1_blk = _blockdiag(w1, w1).astype(cdt)                           # (2Fin, 2Fout)
    adj_c = adj.astype(cdt)
    gn_c = graph_neigh.astype(cdt)
    w2_c = w2.astype(cdt)
    wd1_blk = _blockdiag(dw1, dw1).astype(cdt)                        # (2Fout, 2Fout)
    wd2_blk = _blockdiag(dw2, dw2).astype(cdt)
    bd1 = jnp.concatenate([db1, db1], axis=1).astype(f32)             # (1, 2Fout)
    bd2 = jnp.concatenate([db2, db2], axis=1).astype(f32)

    W1s = 3 * Fout            # slab1: [hiden | dec | dec_a]
    W2s = Fin + 2 * Fout      # slab2: [h | ret | ret_a]

    row_tile = lambda w: pl.BlockSpec((TM, w), lambda i: (i, 0))
    full = lambda r, c: pl.BlockSpec((r, c), lambda i: (0, 0))

    # ---------------- stage 1: first adj pass + all row-local work -------------
    def _stage1_kernel(fw_ref, w1b_ref, adj_ref, w2_ref, wd1_ref, bd1_ref,
                       wd2_ref, bd2_ref, emb_ref, hw_ref, slab1_ref, p_scr):
        # P = [feat@w1 | feat_a@w1], computed once, kept resident in VMEM scratch.
        @pl.when(pl.program_id(0) == 0)
        def _():
            p_scr[...] = jnp.dot(fw_ref[...], w1b_ref[...],
                                 preferred_element_type=f32).astype(p_scr.dtype)

        zz = jnp.dot(adj_ref[...], p_scr[...],
                     preferred_element_type=f32)          # (TM, 2Fout) = [z | z_a]
        emb = jnp.maximum(zz, 0.0).astype(cdt)            # [emb | emb_a]
        emb_ref[...] = emb
        # emb @ w2 (row-local) -> RHS of the second adj pass in stage 2.
        hw_ref[...] = jnp.dot(emb[:, :Fout], w2_ref[...],
                              preferred_element_type=f32).astype(hw_ref.dtype)
        # decoder for both branches via block-diagonal weights (one matmul each).
        d1 = jnp.maximum(jnp.dot(emb, wd1_ref[...],
                                 preferred_element_type=f32) + bd1_ref[...], 0.0)
        dcat = jnp.dot(d1.astype(cdt), wd2_ref[...],
                       preferred_element_type=f32) + bd2_ref[...]
        # lane-dense slab store: [hiden | dec | dec_a]
        slab1_ref[...] = jnp.concatenate([zz[:, :Fout], dcat], axis=1)

    emb_c, hw, slab1 = pl.pallas_call(
        _stage1_kernel,
        grid=(T,),
        in_specs=[
            full(N, 2 * Fin),            # [feat | feat_a]          (resident)
            full(2 * Fin, 2 * Fout),     # blockdiag(w1, w1)        (resident)
            row_tile(N),                 # adj row tile             (pipelined)
            full(Fout, Fin),             # w2
            full(2 * Fout, 2 * Fout),    # blockdiag(dw1, dw1)
            full(1, 2 * Fout),           # [db1 | db1]
            full(2 * Fout, 2 * Fout),    # blockdiag(dw2, dw2)
            full(1, 2 * Fout),           # [db2 | db2]
        ],
        out_specs=(row_tile(2 * Fout), row_tile(Fin), row_tile(W1s)),
        out_shape=(
            jax.ShapeDtypeStruct((N, 2 * Fout), cdt),    # [emb | emb_a]
            jax.ShapeDtypeStruct((N, Fin), cdt),         # emb @ w2
            jax.ShapeDtypeStruct((N, W1s), f32),         # [hiden | dec | dec_a]
        ),
        scratch_shapes=[pltpu.VMEM((N, 2 * Fout), cdt)],
        compiler_params=pltpu.CompilerParams(
            dimension_semantics=("arbitrary",),          # scratch init at step 0
            vmem_limit_bytes=vlim),
    )(feat_wide, w1_blk, adj_c, w2_c, wd1_blk, bd1, wd2_blk, bd2)

    # ---------------- stage 2: second adj pass + graph_neigh pass --------------
    def _stage2_kernel(adj_ref, gn_ref, hw_ref, emb_ref, slab2_ref):
        h_t = jnp.dot(adj_ref[...], hw_ref[...],
                      preferred_element_type=f32)                     # (TM, Fin)
        g = jnp.dot(gn_ref[...], emb_ref[...],
                    preferred_element_type=f32)                       # (TM, 2Fout)
        # rowsum computed once per tile; divide on the EUP via approx reciprocal
        # (scale error cancels exactly in the L2-normalize below).
        rs = jnp.sum(gn_ref[...].astype(f32), axis=1, keepdims=True)  # (TM, 1)
        g = g * pl.reciprocal(rs, approx=True)

        def norm_sig(x):
            n2 = jnp.sum(x * x, axis=1, keepdims=True)
            xn = x * lax.rsqrt(jnp.maximum(n2, 1e-24))   # F.normalize(p=2, dim=1)
            return 1.0 / (1.0 + jnp.exp(-xn))            # sigmoid (exp on EUP)

        ret = norm_sig(g[:, :Fout])
        ret_a = norm_sig(g[:, Fout:])
        slab2_ref[...] = jnp.concatenate([h_t, ret, ret_a], axis=1)

    slab2 = pl.pallas_call(
        _stage2_kernel,
        grid=(T,),
        in_specs=[
            row_tile(N),                 # adj row tile         (pipelined)
            row_tile(N),                 # graph_neigh row tile (pipelined)
            full(N, Fin),                # emb @ w2             (resident)
            full(N, 2 * Fout),           # [emb | emb_a]        (resident)
        ],
        out_specs=row_tile(W2s),
        out_shape=jax.ShapeDtypeStruct((N, W2s), f32),   # [h | ret | ret_a]
        compiler_params=pltpu.CompilerParams(
            dimension_semantics=("parallel",),           # v7x: shard row tiles
            vmem_limit_bytes=vlim),
    )(adj_c, gn_c, hw, emb_c)

    hiden = slab1[:, :Fout]
    dec = slab1[:, Fout:2 * Fout]
    dec_a = slab1[:, 2 * Fout:]
    h = slab2[:, :Fin]
    ret = slab2[:, Fin:Fin + Fout]
    ret_a = slab2[:, Fin + Fout:]
    return hiden, h, dec, dec_a, ret, ret_a


# ----------------------------- references ------------------------------------
def _reference_mirrored(feat, feat_a, adj, graph_neigh,
                        w1, w2, dw1, db1, dw2, db2, compute_dtype=jnp.bfloat16):
    """Pure-JAX mirror of the kernel's exact math (same bf16 cast points)."""
    f32 = jnp.float32
    c = lambda x: x.astype(compute_dtype)
    Fout = w1.shape[1]

    fw = c(jnp.concatenate([feat, feat_a], axis=1))
    P = c(jnp.dot(fw, c(_blockdiag(w1, w1)), preferred_element_type=f32))
    adj_c, gn_c = c(adj), c(graph_neigh)

    zz = jnp.dot(adj_c, P, preferred_element_type=f32)
    hiden = zz[:, :Fout]
    emb = c(jnp.maximum(zz, 0.0))

    hw = c(jnp.dot(emb[:, :Fout], c(w2), preferred_element_type=f32))
    h = jnp.dot(adj_c, hw, preferred_element_type=f32)

    bd1 = jnp.concatenate([db1, db1], axis=1)
    bd2 = jnp.concatenate([db2, db2], axis=1)
    d1 = jnp.maximum(jnp.dot(emb, c(_blockdiag(dw1, dw1)),
                             preferred_element_type=f32) + bd1, 0.0)
    dcat = jnp.dot(c(d1), c(_blockdiag(dw2, dw2)),
                   preferred_element_type=f32) + bd2

    g = jnp.dot(gn_c, emb, preferred_element_type=f32)
    g = g / jnp.sum(gn_c.astype(f32), axis=1, keepdims=True)

    def norm_sig(x):
        n = jnp.sqrt(jnp.sum(x * x, axis=1, keepdims=True))
        x = x / jnp.maximum(n, 1e-12)
        return 1.0 / (1.0 + jnp.exp(-x))

    return (hiden, h, dcat[:, :Fout], dcat[:, Fout:],
            norm_sig(g[:, :Fout]), norm_sig(g[:, Fout:]))


def _reference_f32(feat, feat_a, adj, graph_neigh, w1, w2, dw1, db1, dw2, db2):
    """Exact float32 forward of the PyTorch module (eval mode)."""
    relu = lambda x: jnp.maximum(x, 0.0)
    z = adj @ (feat @ w1)
    emb = relu(z)
    h = adj @ (emb @ w2)
    emb_a = relu(adj @ (feat_a @ w1))
    dec = relu(emb @ dw1 + db1) @ dw2 + db2
    dec_a = relu(emb_a @ dw1 + db1) @ dw2 + db2

    def readout(e):
        g = (graph_neigh @ e) / jnp.sum(graph_neigh, axis=1, keepdims=True)
        n = jnp.sqrt(jnp.sum(g * g, axis=1, keepdims=True))
        return g / jnp.maximum(n, 1e-12)

    sig = lambda x: 1.0 / (1.0 + jnp.exp(-x))
    return z, h, dec, dec_a, sig(readout(emb)), sig(readout(emb_a))


if __name__ == "__main__":
    key = jax.random.PRNGKey(0)
    N, Fin, Fout = 8, 32, 16
    keys = jax.random.split(key, 10)

    feat = jax.random.normal(keys[0], (N, Fin), jnp.float32)
    feat_a = jax.random.normal(keys[1], (N, Fin), jnp.float32)

    # symmetric-ish dense adjacency with self loops, row-normalized
    a = (jax.random.uniform(keys[2], (N, N)) > 0.6).astype(jnp.float32)
    a = jnp.maximum(a, a.T) + jnp.eye(N, dtype=jnp.float32)
    adj = a / jnp.sum(a, axis=1, keepdims=True)

    # binary neighborhood mask with self loops (guarantees nonzero row sums)
    graph_neigh = (jax.random.uniform(keys[3], (N, N)) > 0.5).astype(jnp.float32)
    graph_neigh = jnp.maximum(graph_neigh, jnp.eye(N, dtype=jnp.float32))

    def xavier(k, shape):
        bound = (6.0 / (shape[0] + shape[1])) ** 0.5
        return jax.random.uniform(k, shape, jnp.float32, -bound, bound)

    w1 = xavier(keys[4], (Fin, Fout))
    w2 = xavier(keys[5], (Fout, Fin))

    lin_bound = 1.0 / (Fout ** 0.5)
    dw1 = jax.random.uniform(keys[6], (Fout, Fout), jnp.float32, -lin_bound, lin_bound)
    db1 = jax.random.uniform(keys[7], (1, Fout), jnp.float32, -lin_bound, lin_bound)
    dw2 = jax.random.uniform(keys[8], (Fout, Fout), jnp.float32, -lin_bound, lin_bound)
    db2 = jax.random.uniform(keys[9], (1, Fout), jnp.float32, -lin_bound, lin_bound)

    args = (feat, feat_a, adj, graph_neigh, w1, w2, dw1, db1, dw2, db2)

    fwd = jax.jit(encoder_sparse_forward)
    outs = jax.block_until_ready(fwd(*args))

    # tight check against a reference that mirrors the kernel's exact cast points
    refs = _reference_mirrored(*args)
    for o, r in zip(outs, refs):
        assert o.shape == r.shape and o.dtype == r.dtype
        assert float(jnp.max(jnp.abs(o - r))) < 1e-2, "mismatch vs mirrored reference"

    # loose sanity check against the exact f32 module forward (bf16 inputs only)
    refs32 = _reference_f32(*args)
    for o, r in zip(outs, refs32):
        scale = float(jnp.max(jnp.abs(r))) + 1.0
        assert float(jnp.max(jnp.abs(o - r))) < 0.1 * scale, "mismatch vs f32 reference"

    print("KERNEL_OK")
</pallas_src>

<mosaic_0001>
module attributes {stable_mosaic.version = 11 : i64} {
  func.func @_stage2_kernel(%arg0: i32, %arg1: memref<8x8xbf16, #tpu.memory_space<vmem>>, %arg2: memref<8x8xbf16, #tpu.memory_space<vmem>>, %arg3: memref<8x32xbf16, #tpu.memory_space<vmem>>, %arg4: memref<8x32xbf16, #tpu.memory_space<vmem>>, %arg5: memref<8x64xf32, #tpu.memory_space<vmem>>) attributes {dimension_semantics = [#tpu.dimension_semantics<parallel>], iteration_bounds = array<i64: 1>, scalar_prefetch = 0 : i64, scratch_operands = 0 : i64, tpu.core_type = #tpu.core_type<tc>, window_params = [{transform_indices = @transform_0, window_bounds = array<i64: 8, 8>}, {transform_indices = @transform_1, window_bounds = array<i64: 8, 8>}, {pipeline_mode = #tpu.pipeline_mode<synchronous>, transform_indices = @transform_2, window_bounds = array<i64: 8, 32>}, {pipeline_mode = #tpu.pipeline_mode<synchronous>, transform_indices = @transform_3, window_bounds = array<i64: 8, 32>}, {transform_indices = @transform_4, window_bounds = array<i64: 8, 64>}]} {
    %c0 = arith.constant 0 : index
    %c0_0 = arith.constant 0 : index
    %0 = vector.load %arg1[%c0, %c0_0] : memref<8x8xbf16, #tpu.memory_space<vmem>>, vector<8x8xbf16>
    %c0_1 = arith.constant 0 : index
    %c0_2 = arith.constant 0 : index
    %1 = vector.load %arg3[%c0_1, %c0_2] : memref<8x32xbf16, #tpu.memory_space<vmem>>, vector<8x32xbf16>
    %cst = arith.constant dense<0.000000e+00> : vector<8x32xf32>
    %2 = tpu.matmul %0, %1, %cst {dimension_numbers = #tpu.dot_dimension_numbers<[1], [0], [0], [1], [0, 0, 1, 1], [], []>} : vector<8x8xbf16>, vector<8x32xbf16>, vector<8x32xf32> -> vector<8x32xf32>
    %c0_3 = arith.constant 0 : index
    %c0_4 = arith.constant 0 : index
    %3 = vector.load %arg2[%c0_3, %c0_4] : memref<8x8xbf16, #tpu.memory_space<vmem>>, vector<8x8xbf16>
    %c0_5 = arith.constant 0 : index
    %c0_6 = arith.constant 0 : index
    %4 = vector.load %arg4[%c0_5, %c0_6] : memref<8x32xbf16, #tpu.memory_space<vmem>>, vector<8x32xbf16>
    %cst_7 = arith.constant dense<0.000000e+00> : vector<8x32xf32>
    %5 = tpu.matmul %3, %4, %cst_7 {dimension_numbers = #tpu.dot_dimension_numbers<[1], [0], [0], [1], [0, 0, 1, 1], [], []>} : vector<8x8xbf16>, vector<8x32xbf16>, vector<8x32xf32> -> vector<8x32xf32>
    %c0_8 = arith.constant 0 : index
    %c0_9 = arith.constant 0 : index
    %6 = vector.load %arg2[%c0_8, %c0_9] : memref<8x8xbf16, #tpu.memory_space<vmem>>, vector<8x8xbf16>
    %7 = arith.extf %6 : vector<8x8xbf16> to vector<8x8xf32>
    %cst_10 = arith.constant dense<0.000000e+00> : vector<8xf32>
    %8 = vector.multi_reduction <add>, %7, %cst_10 [1] : vector<8x8xf32> to vector<8xf32>
    %9 = vector.shape_cast %8 : vector<8xf32> to vector<8x1xf32>
    %10 = tpu.reciprocal %9 {approx = true} : vector<8x1xf32> -> vector<8x1xf32>
    %11 = vector.broadcast %10 : vector<8x1xf32> to vector<8x32xf32>
    %12 = arith.mulf %5, %11 : vector<8x32xf32>
    %13 = vector.extract_strided_slice %12 {offsets = [0, 0], sizes = [8, 16], strides = [1, 1]} : vector<8x32xf32> to vector<8x16xf32>
    %14 = arith.mulf %13, %13 : vector<8x16xf32>
    %cst_11 = arith.constant dense<0.000000e+00> : vector<8xf32>
    %15 = vector.multi_reduction <add>, %14, %cst_11 [1] : vector<8x16xf32> to vector<8xf32>
    %16 = vector.shape_cast %15 : vector<8xf32> to vector<8x1xf32>
    %cst_12 = arith.constant 1.000000e-24 : f32
    %17 = vector.broadcast %cst_12 : f32 to vector<8x1xf32>
    %18 = arith.maximumf %16, %17 : vector<8x1xf32>
    %19 = math.rsqrt %18 : vector<8x1xf32>
    %20 = vector.broadcast %19 : vector<8x1xf32> to vector<8x16xf32>
    %21 = arith.mulf %13, %20 : vector<8x16xf32>
    %cst_13 = arith.constant 0.000000e+00 : f32
    %22 = vector.broadcast %cst_13 : f32 to vector<8x16xf32>
    %23 = arith.subf %22, %21 : vector<8x16xf32>
    %24 = math.exp %23 : vector<8x16xf32>
    %cst_14 = arith.constant 1.000000e+00 : f32
    %25 = vector.broadcast %cst_14 : f32 to vector<8x16xf32>
    %26 = arith.addf %25, %24 : vector<8x16xf32>
    %cst_15 = arith.constant 1.000000e+00 : f32
    %27 = vector.broadcast %cst_15 : f32 to vector<8x16xf32>
    %28 = arith.divf %27, %26 : vector<8x16xf32>
    %29 = vector.extract_strided_slice %12 {offsets = [0, 16], sizes = [8, 16], strides = [1, 1]} : vector<8x32xf32> to vector<8x16xf32>
    %30 = arith.mulf %29, %29 : vector<8x16xf32>
    %cst_16 = arith.constant dense<0.000000e+00> : vector<8xf32>
    %31 = vector.multi_reduction <add>, %30, %cst_16 [1] : vector<8x16xf32> to vector<8xf32>
    %32 = vector.shape_cast %31 : vector<8xf32> to vector<8x1xf32>
    %cst_17 = arith.constant 1.000000e-24 : f32
    %33 = vector.broadcast %cst_17 : f32 to vector<8x1xf32>
    %34 = arith.maximumf %32, %33 : vector<8x1xf32>
    %35 = math.rsqrt %34 : vector<8x1xf32>
    %36 = vector.broadcast %35 : vector<8x1xf32> to vector<8x16xf32>
    %37 = arith.mulf %29, %36 : vector<8x16xf32>
    %cst_18 = arith.constant 0.000000e+00 : f32
    %38 = vector.broadcast %cst_18 : f32 to vector<8x16xf32>
    %39 = arith.subf %38, %37 : vector<8x16xf32>
    %40 = math.exp %39 : vector<8x16xf32>
    %cst_19 = arith.constant 1.000000e+00 : f32
    %41 = vector.broadcast %cst_19 : f32 to vector<8x16xf32>
    %42 = arith.addf %41, %40 : vector<8x16xf32>
    %cst_20 = arith.constant 1.000000e+00 : f32
    %43 = vector.broadcast %cst_20 : f32 to vector<8x16xf32>
    %44 = arith.divf %43, %42 : vector<8x16xf32>
    %45 = tpu.concatenate %2, %28, %44 in 1 : vector<8x32xf32>, vector<8x16xf32>, vector<8x16xf32> -> vector<8x64xf32>
    %c0_21 = arith.constant 0 : index
    %c0_22 = arith.constant 0 : index
    %46 = vector.load %arg5[%c0_21, %c0_22] : memref<8x64xf32, #tpu.memory_space<vmem>>, vector<8x64xf32>
    tpu.vector_store %arg5[%c0_21, %c0_22], %45 {strides = array<i32>} : memref<8x64xf32, #tpu.memory_space<vmem>>, vector<8x64xf32>,
    return
  }
  func.func @transform_0(%arg0: i32) -> (i32, i32) {
    %c0_i32 = arith.constant 0 : i32
    %c0_i32_0 = arith.constant 0 : i32
    return %arg0, %c0_i32 : i32, i32
  }
  func.func @transform_1(%arg0: i32) -> (i32, i32) {
    %c0_i32 = arith.constant 0 : i32
    %c0_i32_0 = arith.constant 0 : i32
    return %arg0, %c0_i32 : i32, i32
  }
  func.func @transform_2(%arg0: i32) -> (i32, i32) {
    %c0_i32 = arith.constant 0 : i32
    %c0_i32_0 = arith.constant 0 : i32
    %c0_i32_1 = arith.constant 0 : i32
    return %c0_i32, %c0_i32_0 : i32, i32
  }
  func.func @transform_3(%arg0: i32) -> (i32, i32) {
    %c0_i32 = arith.constant 0 : i32
    %c0_i32_0 = arith.constant 0 : i32
    %c0_i32_1 = arith.constant 0 : i32
    return %c0_i32, %c0_i32_0 : i32, i32
  }
  func.func @transform_4(%arg0: i32) -> (i32, i32) {
    %c0_i32 = arith.constant 0 : i32
    %c0_i32_0 = arith.constant 0 : i32
    return %arg0, %c0_i32 : i32, i32
  }
}

module attributes {stable_mosaic.version = 11 : i64} {
  func.func @_stage1_kernel(%arg0: i32, %arg1: memref<8x64xbf16, #tpu.memory_space<vmem>>, %arg2: memref<64x32xbf16, #tpu.memory_space<vmem>>, %arg3: memref<8x8xbf16, #tpu.memory_space<vmem>>, %arg4: memref<16x32xbf16, #tpu.memory_space<vmem>>, %arg5: memref<32x32xbf16, #tpu.memory_space<vmem>>, %arg6: memref<1x32xf32, #tpu.memory_space<vmem>>, %arg7: memref<32x32xbf16, #tpu.memory_space<vmem>>, %arg8: memref<1x32xf32, #tpu.memory_space<vmem>>, %arg9: memref<8x32xbf16, #tpu.memory_space<vmem>>, %arg10: memref<8x32xbf16, #tpu.memory_space<vmem>>, %arg11: memref<8x48xf32, #tpu.memory_space<vmem>>, %arg12: memref<8x32xbf16, #tpu.memory_space<vmem>>) attributes {dimension_semantics = [#tpu.dimension_semantics<arbitrary>], iteration_bounds = array<i64: 1>, scalar_prefetch = 0 : i64, scratch_operands = 1 : i64, tpu.core_type = #tpu.core_type<tc>, window_params = [{pipeline_mode = #tpu.pipeline_mode<synchronous>, transform_indices = @transform_0, window_bounds = array<i64: 8, 64>}, {pipeline_mode = #tpu.pipeline_mode<synchronous>, transform_indices = @transform_1, window_bounds = array<i64: 64, 32>}, {transform_indices = @transform_2, window_bounds = array<i64: 8, 8>}, {pipeline_mode = #tpu.pipeline_mode<synchronous>, transform_indices = @transform_3, window_bounds = array<i64: 16, 32>}, {pipeline_mode = #tpu.pipeline_mode<synchronous>, transform_indices = @transform_4, window_bounds = array<i64: 32, 32>}, {pipeline_mode = #tpu.pipeline_mode<synchronous>, transform_indices = @transform_5, window_bounds = array<i64: 1, 32>}, {pipeline_mode = #tpu.pipeline_mode<synchronous>, transform_indices = @transform_6, window_bounds = array<i64: 32, 32>}, {pipeline_mode = #tpu.pipeline_mode<synchronous>, transform_indices = @transform_7, window_bounds = array<i64: 1, 32>}, {transform_indices = @transform_8, window_bounds = array<i64: 8, 32>}, {transform_indices = @transform_9, window_bounds = array<i64: 8, 32>}, {transform_indices = @transform_10, window_bounds = array<i64: 8, 48>}]} {
    %c0_i32 = arith.constant 0 : i32
    %0 = arith.cmpi eq, %arg0, %c0_i32 : i32
    %1 = arith.extui %0 : i1 to i32
    %c0_i32_0 = arith.constant 0 : i32
    %2 = arith.cmpi ne, %1, %c0_i32_0 : i32
    scf.if %2 {
      %c0_25 = arith.constant 0 : index
      %c0_26 = arith.constant 0 : index
      %31 = vector.load %arg1[%c0_25, %c0_26] : memref<8x64xbf16, #tpu.memory_space<vmem>>, vector<8x64xbf16>
      %c0_27 = arith.constant 0 : index
      %c0_28 = arith.constant 0 : index
      %32 = vector.load %arg2[%c0_27, %c0_28] : memref<64x32xbf16, #tpu.memory_space<vmem>>, vector<64x32xbf16>
      %cst_29 = arith.constant dense<0.000000e+00> : vector<8x32xf32>
      %33 = tpu.matmul %31, %32, %cst_29 {dimension_numbers = #tpu.dot_dimension_numbers<[1], [0], [0], [1], [0, 0, 1, 1], [], []>} : vector<8x64xbf16>, vector<64x32xbf16>, vector<8x32xf32> -> vector<8x32xf32>
      %34 = arith.truncf %33 : vector<8x32xf32> to vector<8x32xbf16>
      %c0_30 = arith.constant 0 : index
      %c0_31 = arith.constant 0 : index
      %35 = vector.load %arg12[%c0_30, %c0_31] : memref<8x32xbf16, #tpu.memory_space<vmem>>, vector<8x32xbf16>
      tpu.vector_store %arg12[%c0_30, %c0_31], %34 {strides = array<i32>} : memref<8x32xbf16, #tpu.memory_space<vmem>>, vector<8x32xbf16>,
    } else {
    }
    %c0 = arith.constant 0 : index
    %c0_1 = arith.constant 0 : index
    %3 = vector.load %arg3[%c0, %c0_1] : memref<8x8xbf16, #tpu.memory_space<vmem>>, vector<8x8xbf16>
    %c0_2 = arith.constant 0 : index
    %c0_3 = arith.constant 0 : index
    %4 = vector.load %arg12[%c0_2, %c0_3] : memref<8x32xbf16, #tpu.memory_space<vmem>>, vector<8x32xbf16>
    %cst = arith.constant dense<0.000000e+00> : vector<8x32xf32>
    %5 = tpu.matmul %3, %4, %cst {dimension_numbers = #tpu.dot_dimension_numbers<[1], [0], [0], [1], [0, 0, 1, 1], [], []>} : vector<8x8xbf16>, vector<8x32xbf16>, vector<8x32xf32> -> vector<8x32xf32>
    %cst_4 = arith.constant 0.000000e+00 : f32
    %6 = vector.broadcast %cst_4 : f32 to vector<8x32xf32>
    %7 = arith.maximumf %5, %6 : vector<8x32xf32>
    %8 = arith.truncf %7 : vector<8x32xf32> to vector<8x32xbf16>
    %c0_5 = arith.constant 0 : index
    %c0_6 = arith.constant 0 : index
    %9 = vector.load %arg9[%c0_5, %c0_6] : memref<8x32xbf16, #tpu.memory_space<vmem>>, vector<8x32xbf16>
    tpu.vector_store %arg9[%c0_5, %c0_6], %8 {strides = array<i32>} : memref<8x32xbf16, #tpu.memory_space<vmem>>, vector<8x32xbf16>,
    %10 = vector.extract_strided_slice %8 {offsets = [0, 0], sizes = [8, 16], strides = [1, 1]} : vector<8x32xbf16> to vector<8x16xbf16>
    %c0_7 = arith.constant 0 : index
    %c0_8 = arith.constant 0 : index
    %11 = vector.load %arg4[%c0_7, %c0_8] : memref<16x32xbf16, #tpu.memory_space<vmem>>, vector<16x32xbf16>
    %cst_9 = arith.constant dense<0.000000e+00> : vector<8x32xf32>
    %12 = tpu.matmul %10, %11, %cst_9 {dimension_numbers = #tpu.dot_dimension_numbers<[1], [0], [0], [1], [0, 0, 1, 1], [], []>} : vector<8x16xbf16>, vector<16x32xbf16>, vector<8x32xf32> -> vector<8x32xf32>
    %13 = arith.truncf %12 : vector<8x32xf32> to vector<8x32xbf16>
    %c0_10 = arith.constant 0 : index
    %c0_11 = arith.constant 0 : index
    %14 = vector.load %arg10[%c0_10, %c0_11] : memref<8x32xbf16, #tpu.memory_space<vmem>>, vector<8x32xbf16>
    tpu.vector_store %arg10[%c0_10, %c0_11], %13 {strides = array<i32>} : memref<8x32xbf16, #tpu.memory_space<vmem>>, vector<8x32xbf16>,
    %c0_12 = arith.constant 0 : index
    %c0_13 = arith.constant 0 : index
    %15 = vector.load %arg5[%c0_12, %c0_13] : memref<32x32xbf16, #tpu.memory_space<vmem>>, vector<32x32xbf16>
    %cst_14 = arith.constant dense<0.000000e+00> : vector<8x32xf32>
    %16 = tpu.matmul %8, %15, %cst_14 {dimension_numbers = #tpu.dot_dimension_numbers<[1], [0], [0], [1], [0, 0, 1, 1], [], []>} : vector<8x32xbf16>, vector<32x32xbf16>, vector<8x32xf32> -> vector<8x32xf32>
    %c0_15 = arith.constant 0 : index
    %c0_16 = arith.constant 0 : index
    %17 = vector.load %arg6[%c0_15, %c0_16] : memref<1x32xf32, #tpu.memory_space<vmem>>, vector<1x32xf32>
    %18 = vector.broadcast %17 : vector<1x32xf32> to vector<8x32xf32>
    %19 = arith.addf %16, %18 : vector<8x32xf32>
    %cst_17 = arith.constant 0.000000e+00 : f32
    %20 = vector.broadcast %cst_17 : f32 to vector<8x32xf32>
    %21 = arith.maximumf %19, %20 : vector<8x32xf32>
    %22 = arith.truncf %21 : vector<8x32xf32> to vector<8x32xbf16>
    %c0_18 = arith.constant 0 : index
    %c0_19 = arith.constant 0 : index
    %23 = vector.load %arg7[%c0_18, %c0_19] : memref<32x32xbf16, #tpu.memory_space<vmem>>, vector<32x32xbf16>
    %cst_20 = arith.constant dense<0.000000e+00> : vector<8x32xf32>
    %24 = tpu.matmul %22, %23, %cst_20 {dimension_numbers = #tpu.dot_dimension_numbers<[1], [0], [0], [1], [0, 0, 1, 1], [], []>} : vector<8x32xbf16>, vector<32x32xbf16>, vector<8x32xf32> -> vector<8x32xf32>
    %c0_21 = arith.constant 0 : index
    %c0_22 = arith.constant 0 : index
    %25 = vector.load %arg8[%c0_21, %c0_22] : memref<1x32xf32, #tpu.memory_space<vmem>>, vector<1x32xf32>
    %26 = vector.broadcast %25 : vector<1x32xf32> to vector<8x32xf32>
    %27 = arith.addf %24, %26 : vector<8x32xf32>
    %28 = vector.extract_strided_slice %5 {offsets = [0, 0], sizes = [8, 16], strides = [1, 1]} : vector<8x32xf32> to vector<8x16xf32>
    %29 = tpu.concatenate %28, %27 in 1 : vector<8x16xf32>, vector<8x32xf32> -> vector<8x48xf32>
    %c0_23 = arith.constant 0 : index
    %c0_24 = arith.constant 0 : index
    %30 = vector.load %arg11[%c0_23, %c0_24] : memref<8x48xf32, #tpu.memory_space<vmem>>, vector<8x48xf32>
    tpu.vector_store %arg11[%c0_23, %c0_24], %29 {strides = array<i32>} : memref<8x48xf32, #tpu.memory_space<vmem>>, vector<8x48xf32>,
    return
  }
  func.func @transform_0(%arg0: i32) -> (i32, i32) {
    %c0_i32 = arith.constant 0 : i32
    %c0_i32_0 = arith.constant 0 : i32
    %c0_i32_1 = arith.constant 0 : i32
    return %c0_i32, %c0_i32_0 : i32, i32
  }
  func.func @transform_1(%arg0: i32) -> (i32, i32) {
    %c0_i32 = arith.constant 0 : i32
    %c0_i32_0 = arith.constant 0 : i32
    %c0_i32_1 = arith.constant 0 : i32
    return %c0_i32, %c0_i32_0 : i32, i32
  }
  func.func @transform_2(%arg0: i32) -> (i32, i32) {
    %c0_i32 = arith.constant 0 : i32
    %c0_i32_0 = arith.constant 0 : i32
    return %arg0, %c0_i32 : i32, i32
  }
  func.func @transform_3(%arg0: i32) -> (i32, i32) {
    %c0_i32 = arith.constant 0 : i32
    %c0_i32_0 = arith.constant 0 : i32
    %c0_i32_1 = arith.constant 0 : i32
    return %c0_i32, %c0_i32_0 : i32, i32
  }
  func.func @transform_4(%arg0: i32) -> (i32, i32) {
    %c0_i32 = arith.constant 0 : i32
    %c0_i32_0 = arith.constant 0 : i32
    %c0_i32_1 = arith.constant 0 : i32
    return %c0_i32, %c0_i32_0 : i32, i32
  }
  func.func @transform_5(%arg0: i32) -> (i32, i32) {
    %c0_i32 = arith.constant 0 : i32
    %c0_i32_0 = arith.constant 0 : i32
    %c0_i32_1 = arith.constant 0 : i32
    return %c0_i32, %c0_i32_0 : i32, i32
  }
  func.func @transform_6(%arg0: i32) -> (i32, i32) {
    %c0_i32 = arith.constant 0 : i32
    %c0_i32_0 = arith.constant 0 : i32
    %c0_i32_1 = arith.constant 0 : i32
    return %c0_i32, %c0_i32_0 : i32, i32
  }
  func.func @transform_7(%arg0: i32) -> (i32, i32) {
    %c0_i32 = arith.constant 0 : i32
    %c0_i32_0 = arith.constant 0 : i32
    %c0_i32_1 = arith.constant 0 : i32
    return %c0_i32, %c0_i32_0 : i32, i32
  }
  func.func @transform_8(%arg0: i32) -> (i32, i32) {
    %c0_i32 = arith.constant 0 : i32
    %c0_i32_0 = arith.constant 0 : i32
    return %arg0, %c0_i32 : i32, i32
  }
  func.func @transform_9(%arg0: i32) -> (i32, i32) {
    %c0_i32 = arith.constant 0 : i32
    %c0_i32_0 = arith.constant 0 : i32
    return %arg0, %c0_i32 : i32, i32
  }
  func.func @transform_10(%arg0: i32) -> (i32, i32) {
    %c0_i32 = arith.constant 0 : i32
    %c0_i32_0 = arith.constant 0 : i32
    return %arg0, %c0_i32 : i32, i32
  }
}

</mosaic_0001>

<bundles_post_ra>
// kernel: encoder_sparse_forward.3
= control target key start
LH: loop header
LB: loop body
LE: loop exit
PB: predicated region body
PF: predicated region fallthrough
CT: control target
= control target key end

     0   :  { %vm24_vm0 = vcmask 1043456   ;;  %vm20_vm1 = vcmask 64512   ;;  %vm69_vm2 = vcmask 130048   ;;  %s233_s3 = inlined_call_operand.vmem [shape: bf16[8,32], index: 3, kind: input, shape index: {}]   ;;  %s234_s1 = inlined_call_operand.vmem [shape: bf16[8,8], index: 1, kind: input, shape index: {}]   ;;  %s235_s2 = inlined_call_operand.vmem [shape: bf16[8,32], index: 2, kind: input, shape index: {}]   ;;  %s236_s0 = inlined_call_operand.vmem [shape: bf16[8,8], index: 0, kind: input, shape index: {}]   ;;  %s237_s4 = inlined_call_operand.vmem [shape: f32[8,64], index: 4, kind: output, shape index: {}]  }
   0x1   :  { %v42_v0 = vld [vmem:[%s233_s3] sm:$0xf] }
   0x2   :  { %v41_v1 = vld [vmem:[%s234_s1] sm:$0xf]  ;;  %v47_v2 = vsel %vm24_vm0, %v42_v0, 0  ;;  %s178_s1 = smov 112  }
   0x3   :  { %v62_v3 = vunpack.c.l.bf16 %v41_v1  ;;  %56 = vmatpush.bf16.msra.mxu1 %v47_v2  ;;  %v19_v12 = vld [vmem:[%s235_s2] sm:$0xf] }
   0x4   :  { %v26_v13 = vsel %vm24_vm0, %v19_v12, 0  ;;  %v18_v14 = vld [vmem:[%s236_s0] sm:$0xf]  ;;  %s179_s0 = smov 32  }
   0x5   :  { %v63_v4 = vsel %vm20_vm1, %v62_v3, 0.0  ;;  %35 = vmatpush.bf16.msra.mxu0 %v26_v13 }
   0x6   :  { %64 = vadd.xlane.f32.xlu0 %v63_v4  ;;  %161 = vmatmul.msk.bf16.vlgmr.msra.gmra.mxu1 %vm20_vm1, %v41_v1 }
   0x8   :  { %160 = vmatmul.msk.bf16.vlgmr.msra.gmra.mxu0 %vm20_vm1, %v18_v14  ;;  %vm150_vm1 = vcmask 261120  }
  0x79   :  { %v65_v5 = vpop.xlane.xlu0 %64 }
  0x7a   :  { %164 = vrcp.f32 %v65_v5 }
  0x80   :  { %v165_v6 = vpop.eup %164 }
  0x83   :  { %v58_v7 = vpop.f32.mrf.mxu1 }
  0x84   :  { %v214_v8 = vmul.f32 %v165_v6, %v58_v7 }
  0x85   :  { %v37_v41 = vpop.f32.mrf.mxu0 }
  0x86   :  { %v68_v9 = vmul.f32 %v214_v8, %v214_v8 }
  0x88   :  { %105 = vrot.lane.b32.xlu0 %v68_v9, %s178_s1  ;;  %v70_v10 = vsel %vm69_vm2, %v68_v9, 0.0 }
  0x89   :  { %71 = vadd.xlane.f32.xlu1 %v70_v10 }
  0x8b   :  { %v60_v11 = vpop.f32.mrf.mxu1 }
  0x8d   :  { %v39_v44 = vpop.f32.mrf.mxu0 }
  0xfa   :  { %v106_v15 = vpop.permute.xlu0 %105 }
  0xfb   :  { %v108_v16 = vsel %vm69_vm2, %v106_v15, 0.0  ;;  %vm152_vm2 = vcmask 392192  }
  0xfc   :  { %109 = vadd.xlane.f32.xlu1 %v108_v16  ;;  %v72_v17 = vpop.xlane.xlu1 %71 }
  0xfd   :  { %v73_v18 = vmax.f32 %v72_v17, 1e-24 }
  0xff   :  { %166 = vrsqrt.f32 %v73_v18  ;;  %vm80_vm4 = vweird.f32 %v73_v18 }
 0x105   :  { %v167_v19 = vpop.eup %166 }
 0x106   :  { %v75_v20 = vmul.f32 %v167_v19, %v73_v18  ;;  %vm81_vm3 = vweird.f32 %v167_v19 }
 0x107   :  { %vm82_vm5 = vmor %vm80_vm4, %vm81_vm3  ;;  %vm154_vm3 = vcmask 523264  }
 0x108   :  { %v76_v21 = vmul.f32 %v167_v19, %v75_v20 }
 0x10a   :  { %v77_v22 = vmul.f32 0.5, %v76_v21 }
 0x10c   :  { %v78_v23 = vsub.f32 1.5, %v77_v22 }
 0x10e   :  { %v79_v24 = vmul.f32 %v167_v19, %v78_v23 }
 0x110   :  { %v83_v25 = vsel %vm82_vm5, %v167_v19, %v79_v24 }
 0x111   :  { %v84_v26 = vmul.f32 %v83_v25, %v214_v8 }
 0x113   :  { %v85_v27 = vsub.f32 0.0, %v84_v26 }
 0x115   :  { %v86_v28 = vmul.f32 1.442695, %v85_v27 }
 0x117   :  { %168 = vpow2.f32 %v86_v28 }
 0x11d   :  { %v169_v29 = vpop.eup %168 }
 0x11e   :  { %v88_v30 = vadd.f32 1.0, %v169_v29 }
 0x120   :  { %170 = vrcp.f32 %v88_v30  ;;  %v100_v34 = vand.u32 2147483648, %v88_v30  ;;  %v98_v36 = vand.u32 2147483647, %v88_v30  ;;  %vm94_vm7 = vweird.f32 %v88_v30 }
 0x122   :  { %v101_v38 = vor.u32 1.1754944e-38, %v100_v34  ;;  %vm99_vm9 = vcmp.eq.f32.partialorder %v98_v36, 8.507059e+37 }
 0x126   :  { %v171_v31 = vpop.eup %170 }
 0x127   :  { %v90_v32 = vmul.f32 %v171_v31, %v88_v30  ;;  %vm95_vm6 = vweird.f32 %v171_v31 }
 0x128   :  { %vm96_vm8 = vmor %vm94_vm7, %vm95_vm6 }
 0x129   :  { %v91_v33 = vsub.f32 1.0, %v90_v32 }
 0x12b   :  { %v92_v35 = vmul.f32 %v171_v31, %v91_v33 }
 0x12d   :  { %v93_v37 = vadd.f32 %v171_v31, %v92_v35 }
 0x12f   :  { %v97_v39 = vsel %vm96_vm8, %v171_v31, %v93_v37 }
 0x130   :  { %v102_v40 = vsel %vm99_vm9, %v101_v38, %v97_v39 }
 0x131   :  { %143 = vrot.lane.b32.xlu2 %v102_v40, %s179_s0 }
 0x16f   :  { %v110_v42 = vpop.xlane.xlu1 %109 }
 0x170   :  { %v111_v43 = vmax.f32 %v110_v42, 1e-24 }
 0x172   :  { %172 = vrsqrt.f32 %v111_v43  ;;  %vm118_vm11 = vweird.f32 %v111_v43 }
 0x178   :  { %v173_v45 = vpop.eup %172 }
 0x179   :  { %v113_v46 = vmul.f32 %v173_v45, %v111_v43  ;;  %vm119_vm10 = vweird.f32 %v173_v45 }
 0x17a   :  { %vm120_vm12 = vmor %vm118_vm11, %vm119_vm10 }
 0x17b   :  { %v114_v47 = vmul.f32 %v173_v45, %v113_v46 }
 0x17d   :  { %v115_v48 = vmul.f32 0.5, %v114_v47 }
 0x17f   :  { %v116_v49 = vsub.f32 1.5, %v115_v48 }
 0x181   :  { %v117_v50 = vmul.f32 %v173_v45, %v116_v49 }
 0x183   :  { %v121_v51 = vsel %vm120_vm12, %v173_v45, %v117_v50 }
 0x184   :  { %v122_v52 = vmul.f32 %v121_v51, %v214_v8 }
 0x186   :  { %v123_v53 = vsub.f32 0.0, %v122_v52 }
 0x188   :  { %v124_v54 = vmul.f32 1.442695, %v123_v53 }
 0x18a   :  { %174 = vpow2.f32 %v124_v54 }
 0x18b   :  { %v144_v3 = vpop.permute.xlu2 %143 }
 0x18c   :  { %v151_v4 = vsel %vm150_vm1, %v37_v41, %v144_v3 }
 0x190   :  { %v175_v55 = vpop.eup %174 }
 0x191   :  { %v126_v56 = vadd.f32 1.0, %v175_v55 }
 0x193   :  { %176 = vrcp.f32 %v126_v56  ;;  %v138_v60 = vand.u32 2147483648, %v126_v56  ;;  %v136_v62 = vand.u32 2147483647, %v126_v56  ;;  %vm132_vm14 = vweird.f32 %v126_v56 }
 0x195   :  { %v139_v0 = vor.u32 1.1754944e-38, %v138_v60  ;;  %vm137_vm0 = vcmp.eq.f32.partialorder %v136_v62, 8.507059e+37 }
 0x199   :  { %v177_v57 = vpop.eup %176 }
 0x19a   :  { %v128_v58 = vmul.f32 %v177_v57, %v126_v56  ;;  %vm133_vm13 = vweird.f32 %v177_v57 }
 0x19b   :  { %vm134_vm15 = vmor %vm132_vm14, %vm133_vm13 }
 0x19c   :  { %v129_v59 = vsub.f32 1.0, %v128_v58 }
 0x19e   :  { %v130_v61 = vmul.f32 %v177_v57, %v129_v59 }
 0x1a0   :  { %v131_v63 = vadd.f32 %v177_v57, %v130_v61 }
 0x1a2   :  { %v135_v1 = vsel %vm134_vm15, %v177_v57, %v131_v63 }
 0x1a3   :  { %v140_v2 = vsel %vm137_vm0, %v139_v0, %v135_v1 }
 0x1a4   :  { %147 = vrot.lane.b32.xlu2 %v140_v2, %s179_s0 }
 0x1fe   :  { %v148_v5 = vpop.permute.xlu2 %147 }
 0x1ff   :  { %v153_v6 = vsel %vm152_vm2, %v151_v4, %v148_v5 }
 0x200   :  { %155 = vst.msk [vmem:[%s237_s4] sm:$0xff] %vm154_vm3, %v153_v6 }

// kernel: encoder_sparse_forward.2
= control target key start
LH: loop header
LB: loop body
LE: loop exit
PB: predicated region body
PF: predicated region fallthrough
CT: control target
= control target key end

     0   :  { %vm70_vm0 = vcmask 523264   ;;  %vm88_vm1 = vcmask 257024   ;;  %vm96_vm2 = vcmask 1043456   ;;  %vm92_vm3 = vcmask 64512   ;;  %s401_s1 = inlined_call_operand.vmem [shape: bf16[64,32], index: 1, kind: input, shape index: {}]   ;;  %s402_s0 = inlined_call_operand.vmem [shape: bf16[8,64], index: 0, kind: input, shape index: {}]   ;;  %s403_s4 = inlined_call_operand.vmem [shape: bf16[32,32], index: 4, kind: input, shape index: {}]   ;;  %s404_s2 = inlined_call_operand.vmem [shape: bf16[8,8], index: 2, kind: input, shape index: {}]   ;;  %s405_s3 = inlined_call_operand.vmem [shape: bf16[16,32], index: 3, kind: input, shape index: {}]   ;;  %s406_s6 = inlined_call_operand.vmem [shape: bf16[32,32], index: 6, kind: input, shape index: {}]   ;;  %s407_s8 = inlined_call_operand.vmem [shape: bf16[8,32], index: 8, kind: output, shape index: {0}]   ;;  %s408_s5 = inlined_call_operand.vmem [shape: f32[1,32], index: 5, kind: input, shape index: {}]   ;;  %s409_s7 = inlined_call_operand.vmem [shape: f32[1,32], index: 7, kind: input, shape index: {}]   ;;  %s410_s9 = inlined_call_operand.vmem [shape: bf16[8,32], index: 9, kind: output, shape index: {1}]   ;;  %s411_s10 = inlined_call_operand.vmem [shape: f32[8,48], index: 10, kind: output, shape index: {2}]  }
   0x1   :  { %v281_v0 = vld [vmem:[%s401_s1 + $0x18] sm:$0xff]  ;;  %v280_v1 = vld [vmem:[%s401_s1 + $0x10] sm:$0xff]  ;;  %v279_v2 = vld [vmem:[%s401_s1 + $0x8] sm:$0xff]  ;;  %vm125_vm4 = vcmask 130048   ;;  %vm164_vm5 = vcmask 261120   ;;  %vm223_vm6 = vcmask 392192  }
   0x2   :  { %78 = vmatpush.bf16.msra.mxu0 %v281_v0  ;;  %v278_v3 = vld [vmem:[%s401_s1] sm:$0xff]  ;;  %v284_v5 = vld [vmem:[%s403_s4 + $0x8] sm:$0xff] }
   0x3   :  { %v37_v4 = vld [vmem:[%s402_s0] sm:$0xf]  ;;  %173 = vmatpush.bf16.msra.mxu3 %v284_v5  ;;  %v286_v14 = vld [vmem:[%s406_s6 + $0x8] sm:$0xff] }
   0x4   :  { %v90_v11 = vld [vmem:[%s404_s2] sm:$0xf] }
   0x5   :  { %v282_v12 = vld [vmem:[%s405_s3] sm:$0xff] }
   0x6   :  { %79 = vmatpush.bf16.msra.mxu0 %v280_v1  ;;  %v283_v13 = vld [vmem:[%s403_s4] sm:$0xff]  ;;  %136 = vmatpush.bf16.msra.mxu2 %v282_v12 }
   0x7   :  { %174 = vmatpush.bf16.msra.mxu3 %v283_v13  ;;  %v285_v15 = vld [vmem:[%s406_s6] sm:$0xff] }
   0x8   :  { %v288_v20 = vld [vmem:[%s408_s5] ss:$0 sm:$0xff]  ;;  %s290_s5 = smov 16  }
   0x9   :  { %v289_v29 = vld [vmem:[%s409_s7] ss:$0 sm:$0xff] }
   0xa   :  { %80 = vmatpush.bf16.msra.mxu0 %v279_v2 }
   0xe   :  { %81 = vmatpush.bf16.msra.mxu0 %v278_v3 }
  0x11   :  { %253 = vmatmul.msk.bf16.vlgmr.msra.gmra.mxu0 %vm70_vm0, %v37_v4 }
  0x8e   :  { %v83_v6 = vpop.f32.mrf.mxu0 }
  0x8f   :  { %v87_v7 = vpack.c.bf16 %v83_v6, %v83_v6 }
  0x91   :  { %89 = vst.msk [vmem:[#allocation2] sm:$0xf] %vm88_vm1, %v87_v7 }
  0x96   :  { %v85_v8 = vpop.f32.mrf.mxu0 }
  0x98   :  { %v91_v9 = vld [vmem:[#allocation2] sm:$0xf] }
  0x99   :  { %v98_v10 = vsel %vm96_vm2, %v91_v9, 0 }
  0x9a   :  { %107 = vmatpush.bf16.msra.mxu1 %v98_v10 }
  0x9d   :  { %254 = vmatmul.msk.bf16.vlgmr.msra.gmra.mxu1 %vm92_vm3, %v90_v11 }
  0x9e   :  { %211 = vmatpush.bf16.msrb.mxu1 %v286_v14 }
  0xa2   :  { %212 = vmatpush.bf16.msrb.mxu1 %v285_v15 }
 0x11a   :  { %v109_v16 = vpop.f32.mrf.mxu1 }
 0x11b   :  { %v113_v17 = vmax.f32 %v109_v16, 0.0 }
 0x11d   :  { %v114_v18 = vpack.c.bf16 %v113_v17, %v113_v17 }
 0x11f   :  { %116 = vst.msk [vmem:[%s407_s8] sm:$0xf] %vm88_vm1, %v114_v18  ;;  %259 = vmatmul.msk.bf16.vlgmr.msra.gmra.mxu2 %vm125_vm4, %v114_v18  ;;  %268 = vmatmul.msk.bf16.vlgmr.msra.gmra.mxu3 %vm164_vm5, %v114_v18 }
 0x122   :  { %v111_v19 = vpop.f32.mrf.mxu1 }
 0x1a2   :  { %v138_v21 = vpop.f32.mrf.mxu2  ;;  %v176_v22 = vpop.f32.mrf.mxu3 }
 0x1a3   :  { %v142_v23 = vpack.c.bf16 %v138_v21, %v138_v21  ;;  %v177_v24 = vadd.f32 %v288_v20, %v176_v22 }
 0x1a5   :  { %143 = vst.msk [vmem:[%s410_s9] sm:$0xf] %vm88_vm1, %v142_v23  ;;  %v180_v25 = vmax.f32 %v177_v24, 0.0 }
 0x1a7   :  { %v181_v26 = vpack.c.bf16 %v180_v25, %v180_v25 }
 0x1a9   :  { %277 = vmatmul.msk.bf16.vlgmr.msrb.gmra.mxu1 %vm164_vm5, %v181_v26 }
 0x1aa   :  { %v140_v27 = vpop.f32.mrf.mxu2  ;;  %v178_v28 = vpop.f32.mrf.mxu3 }
 0x226   :  { %v214_v30 = vpop.f32.mrf.mxu1 }
 0x227   :  { %v215_v31 = vadd.f32 %v289_v29, %v214_v30 }
 0x229   :  { %219 = vrot.lane.b32.xlu0 %v215_v31, %s290_s5 }
 0x22e   :  { %v216_v32 = vpop.f32.mrf.mxu1 }
 0x29b   :  { %v220_v33 = vpop.permute.xlu0 %219 }
 0x29c   :  { %v222_v34 = vsel %vm125_vm4, %v109_v16, %v220_v33 }
 0x29d   :  { %224 = vst.msk [vmem:[%s411_s10] sm:$0xff] %vm223_vm6, %v222_v34 }

</bundles_post_ra>
